<compile_context>
chip_gen: v7x
topology: tpu7x:2x2x1
jax: 0.10.0
libtpu: 0.0.40
codegen_flags: <defaults>
</compile_context>

<pallas_src>
import functools

import jax
import jax.numpy as jnp
import numpy as np
from jax.experimental import pallas as pl
from jax.experimental.pallas import tpu as pltpu

BN_EPS = 1e-5


def _round_up(n, m):
    return ((n + m - 1) // m) * m


def mvp_kernel(x_ref, w1_ref, b1_ref, w2_ref, b2_ref, w3_ref, b3_ref, out_ref, *,
               compute_dtype):
    # x tile: (tb, F) as streamed from HBM; cast in-kernel (no extra HBM pass).
    x = x_ref[...].astype(compute_dtype)
    # h1 = relu(W1^T @ x^T + b1) : (H1, tb), lane-dense. Contract F (last dim of both
    # operands); Mosaic transposes the x tile on the XLU (its own bundle slot).
    h = jax.lax.dot_general(
        w1_ref[...], x,
        dimension_numbers=(((1,), (1,)), ((), ())),
        preferred_element_type=jnp.float32)
    h = jnp.maximum(h + b1_ref[...], 0.0)
    # h2 = relu(W2'^T @ h1 + b2') : (H2, tb).  (BN1 folded into W2'/b2'; Dropout = id.)
    h = jax.lax.dot_general(
        w2_ref[...], h.astype(w2_ref.dtype),
        dimension_numbers=(((1,), (0,)), ((), ())),
        preferred_element_type=jnp.float32)
    h = jnp.maximum(h + b2_ref[...], 0.0)
    # logits = w3' @ h2 + b3' : (1, tb) lane-dense single-row block.  (BN2 folded.)
    logit = jax.lax.dot_general(
        w3_ref[...], h,
        dimension_numbers=(((1,), (0,)), ((), ())),
        preferred_element_type=jnp.float32) + b3_ref[...]
    out_ref[...] = 1.0 / (1.0 + jnp.exp(-logit))


def mvp_predictor(x, folded_params, *, tile_b=8192, compute_dtype=jnp.float32):
    """x: (B, F) f32.  folded_params from fold_params():
       (w1t (H1,F), b1 (H1,1), w2t (H2,H1), b2 (H2,1), w3 (1,H2), b3 (1,1))."""
    w1t, b1, w2t, b2, w3, b3 = folded_params
    B, F = x.shape
    H1 = w1t.shape[0]
    H2 = w2t.shape[0]

    if B <= tile_b:
        # Single grid step: full-array block, just round rows to the f32 sublane (8).
        tb = _round_up(B, 8)
    else:
        # Multi-step grid: tb must be a multiple of 128 so the (1, tb) output block
        # stays lane-aligned (unmasked full-lane stores).  B > tile_b also guarantees
        # the grid has >= 2 steps (v7x megacore sharding via "parallel").
        tb = max(128, (min(tile_b, B) // 128) * 128)
    Bp = _round_up(B, tb)
    if Bp != B:
        x = jnp.pad(x, ((0, Bp - B), (0, 0)))

    # Tiny weights may be pre-cast (they are DMA'd once and stay VMEM-resident);
    # x is NOT cast in the wrapper -- the kernel casts it after the single HBM read.
    w1c = w1t.astype(compute_dtype)
    w2c = w2t.astype(compute_dtype)

    # Rough VMEM budget: x double-buffer (lane-padded to 128) + activation scratch.
    f_pad = _round_up(F, 128)
    est = (2 * tb * f_pad * 4                     # x double-buffer
           + 2 * tb * (H1 + H2) * 4               # h1/h2 scratch (with slack)
           + 4 * tb * 4                           # output double-buffer
           + 4 * (H1 * F + H2 * H1 + H1 + H2 + H2 + 1))
    vmem_limit = int(min(max(2 * est, 32 * 1024 * 1024), 64 * 1024 * 1024))

    cost = pl.CostEstimate(
        flops=int(2 * Bp * (F * H1 + H1 * H2 + H2)),
        transcendentals=int(Bp),
        bytes_accessed=int(Bp * F * x.dtype.itemsize + Bp * 4
                           + 4 * (H1 * F + H2 * H1 + H2 + H1 + H2 + 1)),
    )

    const = lambda i: (0, 0)
    out = pl.pallas_call(
        functools.partial(mvp_kernel, compute_dtype=compute_dtype),
        out_shape=jax.ShapeDtypeStruct((1, Bp), jnp.float32),
        grid=(Bp // tb,),
        in_specs=[
            pl.BlockSpec((tb, F), lambda i: (i, 0)),   # x tile: streamed / double-buffered
            pl.BlockSpec((H1, F), const),              # weights / biases: VMEM-resident
            pl.BlockSpec((H1, 1), const),
            pl.BlockSpec((H2, H1), const),
            pl.BlockSpec((H2, 1), const),
            pl.BlockSpec((1, H2), const),
            pl.BlockSpec((1, 1), const),
        ],
        out_specs=pl.BlockSpec((1, tb), lambda i: (0, i)),
        compiler_params=pltpu.CompilerParams(
            dimension_semantics=("parallel",),
            vmem_limit_bytes=vmem_limit),
        cost_estimate=cost,
    )(x, w1c, b1, w2c, b2, w3, b3)

    return out.reshape(Bp, 1)[:B]


def init_params(key, input_size, hidden_sizes):
    """Raw (torch-equivalent) parameters: Linear stored as (in, out) + BN stats per hidden layer."""
    assert len(hidden_sizes) == 2, "kernel is specialized for two hidden layers"
    sizes = [input_size] + list(hidden_sizes)
    params = []
    for fin, fout in zip(sizes[:-1], sizes[1:]):
        key, kw, kb, kg, kbe, km, kv = jax.random.split(key, 7)
        w = jax.random.normal(kw, (fin, fout), jnp.float32) * (1.0 / np.sqrt(fin))
        b = jax.random.normal(kb, (1, fout), jnp.float32) * 0.1
        gamma = 1.0 + 0.1 * jax.random.normal(kg, (1, fout), jnp.float32)
        beta = 0.1 * jax.random.normal(kbe, (1, fout), jnp.float32)
        r_mean = 0.1 * jax.random.normal(km, (1, fout), jnp.float32)
        r_var = 0.5 + jnp.abs(jax.random.normal(kv, (1, fout), jnp.float32))
        params.extend([w, b, gamma, beta, r_mean, r_var])
    key, kw, kb = jax.random.split(key, 3)
    w3 = jax.random.normal(kw, (sizes[-1], 1), jnp.float32) * (1.0 / np.sqrt(sizes[-1]))
    b3 = jax.random.normal(kb, (1, 1), jnp.float32) * 0.1
    params.extend([w3, b3])
    return tuple(params)


def fold_params(raw):
    """Fold eval-mode BatchNorm into the following Linear and transpose to the
    feature-major forms the kernel consumes."""
    (w1, b1, g1, be1, m1, v1,
     w2, b2, g2, be2, m2, v2,
     w3, b3) = raw
    s1 = g1 / jnp.sqrt(v1 + BN_EPS)                 # (1, H1)
    t1 = be1 - m1 * s1                              # (1, H1)
    s2 = g2 / jnp.sqrt(v2 + BN_EPS)                 # (1, H2)
    t2 = be2 - m2 * s2                              # (1, H2)
    w2f = w2 * s1.reshape(-1, 1)                    # (H1, H2)
    b2f = t1 @ w2 + b2                              # (1, H2)
    w3f = w3 * s2.reshape(-1, 1)                    # (H2, 1)
    b3f = t2 @ w3 + b3                              # (1, 1)
    return (w1.T, b1.reshape(-1, 1),                # (H1, F), (H1, 1)
            w2f.T, b2f.reshape(-1, 1),              # (H2, H1), (H2, 1)
            w3f.reshape(1, -1), b3f)                # (1, H2), (1, 1)


def mvp_reference(x, raw):
    """Pure-JAX reference of the torch eval-mode forward (Dropout=identity, BN uses running stats)."""
    (w1, b1, g1, be1, m1, v1,
     w2, b2, g2, be2, m2, v2,
     w3, b3) = raw
    h = jnp.maximum(x @ w1 + b1, 0.0)
    h = (h - m1) / jnp.sqrt(v1 + BN_EPS) * g1 + be1
    h = jnp.maximum(h @ w2 + b2, 0.0)
    h = (h - m2) / jnp.sqrt(v2 + BN_EPS) * g2 + be2
    return jax.nn.sigmoid(h @ w3 + b3)


if __name__ == "__main__":
    input_size = 32
    hidden_sizes = (64, 32)

    key = jax.random.PRNGKey(0)
    key, kx, kx2 = jax.random.split(key, 3)
    raw = init_params(key, input_size, hidden_sizes)
    folded = fold_params(raw)

    # small batch (grid of 1, full-array blocks)
    batch = 8
    x = jax.random.normal(kx, (batch, input_size), jnp.float32)
    out = jax.block_until_ready(mvp_predictor(x, folded))
    ref = mvp_reference(x, raw)
    assert out.shape == (batch, 1)
    np.testing.assert_allclose(np.asarray(out), np.asarray(ref), rtol=1e-4, atol=1e-5)

    # larger, non-multiple batch with a small tile: exercises the multi-step grid,
    # 128-aligned tiling, padding, and the parallel batch axis
    batch2 = 1000
    x2 = jax.random.normal(kx2, (batch2, input_size), jnp.float32)
    out2 = jax.block_until_ready(mvp_predictor(x2, folded, tile_b=256))
    ref2 = mvp_reference(x2, raw)
    assert out2.shape == (batch2, 1)
    np.testing.assert_allclose(np.asarray(out2), np.asarray(ref2), rtol=1e-4, atol=1e-5)

    # bf16 MXU variant (x cast in-kernel, no extra HBM pass); f32 accumulation / elementwise
    out_bf16 = jax.block_until_ready(
        mvp_predictor(x2, folded, tile_b=256, compute_dtype=jnp.bfloat16))
    np.testing.assert_allclose(np.asarray(out_bf16), np.asarray(ref2), rtol=0.0, atol=5e-2)

    print("KERNEL_OK")
</pallas_src>

<mosaic_0001>
module attributes {stable_mosaic.version = 11 : i64} {
  func.func @mvp_kernel(%arg0: i32, %arg1: memref<8x32xf32, #tpu.memory_space<vmem>>, %arg2: memref<64x32xf32, #tpu.memory_space<vmem>>, %arg3: memref<64x1xf32, #tpu.memory_space<vmem>>, %arg4: memref<32x64xf32, #tpu.memory_space<vmem>>, %arg5: memref<32x1xf32, #tpu.memory_space<vmem>>, %arg6: memref<1x32xf32, #tpu.memory_space<vmem>>, %arg7: memref<1x1xf32, #tpu.memory_space<vmem>>, %arg8: memref<1x8xf32, #tpu.memory_space<vmem>>) attributes {dimension_semantics = [#tpu.dimension_semantics<parallel>], iteration_bounds = array<i64: 1>, scalar_prefetch = 0 : i64, scratch_operands = 0 : i64, tpu.core_type = #tpu.core_type<tc>, window_params = [{transform_indices = @transform_0, window_bounds = array<i64: 8, 32>}, {pipeline_mode = #tpu.pipeline_mode<synchronous>, transform_indices = @transform_1, window_bounds = array<i64: 64, 32>}, {pipeline_mode = #tpu.pipeline_mode<synchronous>, transform_indices = @transform_2, window_bounds = array<i64: 64, 1>}, {pipeline_mode = #tpu.pipeline_mode<synchronous>, transform_indices = @transform_3, window_bounds = array<i64: 32, 64>}, {pipeline_mode = #tpu.pipeline_mode<synchronous>, transform_indices = @transform_4, window_bounds = array<i64: 32, 1>}, {pipeline_mode = #tpu.pipeline_mode<synchronous>, transform_indices = @transform_5, window_bounds = array<i64: 1, 32>}, {pipeline_mode = #tpu.pipeline_mode<synchronous>, transform_indices = @transform_6, window_bounds = array<i64: 1, 1>}, {transform_indices = @transform_7, window_bounds = array<i64: 1, 8>}]} {
    %c0 = arith.constant 0 : index
    %c0_0 = arith.constant 0 : index
    %0 = vector.load %arg1[%c0, %c0_0] : memref<8x32xf32, #tpu.memory_space<vmem>>, vector<8x32xf32>
    %c0_1 = arith.constant 0 : index
    %c0_2 = arith.constant 0 : index
    %1 = vector.load %arg2[%c0_1, %c0_2] : memref<64x32xf32, #tpu.memory_space<vmem>>, vector<64x32xf32>
    %cst = arith.constant dense<0.000000e+00> : vector<64x8xf32>
    %2 = tpu.matmul %1, %0, %cst {dimension_numbers = #tpu.dot_dimension_numbers<[1], [1], [0], [0], [0, 0, 1, 0], [], []>} : vector<64x32xf32>, vector<8x32xf32>, vector<64x8xf32> -> vector<64x8xf32>
    %c0_3 = arith.constant 0 : index
    %c0_4 = arith.constant 0 : index
    %3 = vector.load %arg3[%c0_3, %c0_4] : memref<64x1xf32, #tpu.memory_space<vmem>>, vector<64x1xf32>
    %4 = vector.broadcast %3 : vector<64x1xf32> to vector<64x8xf32>
    %5 = arith.addf %2, %4 : vector<64x8xf32>
    %cst_5 = arith.constant 0.000000e+00 : f32
    %6 = vector.broadcast %cst_5 : f32 to vector<64x8xf32>
    %7 = arith.maximumf %5, %6 : vector<64x8xf32>
    %c0_6 = arith.constant 0 : index
    %c0_7 = arith.constant 0 : index
    %8 = vector.load %arg4[%c0_6, %c0_7] : memref<32x64xf32, #tpu.memory_space<vmem>>, vector<32x64xf32>
    %cst_8 = arith.constant dense<0.000000e+00> : vector<32x8xf32>
    %9 = tpu.matmul %8, %7, %cst_8 {dimension_numbers = #tpu.dot_dimension_numbers<[1], [0], [0], [1], [0, 0, 1, 1], [], []>} : vector<32x64xf32>, vector<64x8xf32>, vector<32x8xf32> -> vector<32x8xf32>
    %c0_9 = arith.constant 0 : index
    %c0_10 = arith.constant 0 : index
    %10 = vector.load %arg5[%c0_9, %c0_10] : memref<32x1xf32, #tpu.memory_space<vmem>>, vector<32x1xf32>
    %11 = vector.broadcast %10 : vector<32x1xf32> to vector<32x8xf32>
    %12 = arith.addf %9, %11 : vector<32x8xf32>
    %cst_11 = arith.constant 0.000000e+00 : f32
    %13 = vector.broadcast %cst_11 : f32 to vector<32x8xf32>
    %14 = arith.maximumf %12, %13 : vector<32x8xf32>
    %c0_12 = arith.constant 0 : index
    %c0_13 = arith.constant 0 : index
    %15 = vector.load %arg6[%c0_12, %c0_13] : memref<1x32xf32, #tpu.memory_space<vmem>>, vector<1x32xf32>
    %cst_14 = arith.constant dense<0.000000e+00> : vector<1x8xf32>
    %16 = tpu.matmul %15, %14, %cst_14 {dimension_numbers = #tpu.dot_dimension_numbers<[1], [0], [0], [1], [0, 0, 1, 1], [], []>} : vector<1x32xf32>, vector<32x8xf32>, vector<1x8xf32> -> vector<1x8xf32>
    %c0_15 = arith.constant 0 : index
    %c0_16 = arith.constant 0 : index
    %17 = vector.load %arg7[%c0_15, %c0_16] : memref<1x1xf32, #tpu.memory_space<vmem>>, vector<1x1xf32>
    %18 = vector.broadcast %17 : vector<1x1xf32> to vector<1x8xf32>
    %19 = arith.addf %16, %18 : vector<1x8xf32>
    %cst_17 = arith.constant 0.000000e+00 : f32
    %20 = vector.broadcast %cst_17 : f32 to vector<1x8xf32>
    %21 = arith.subf %20, %19 : vector<1x8xf32>
    %22 = math.exp %21 : vector<1x8xf32>
    %cst_18 = arith.constant 1.000000e+00 : f32
    %23 = vector.broadcast %cst_18 : f32 to vector<1x8xf32>
    %24 = arith.addf %23, %22 : vector<1x8xf32>
    %cst_19 = arith.constant 1.000000e+00 : f32
    %25 = vector.broadcast %cst_19 : f32 to vector<1x8xf32>
    %26 = arith.divf %25, %24 : vector<1x8xf32>
    %c0_20 = arith.constant 0 : index
    %c0_21 = arith.constant 0 : index
    %27 = vector.load %arg8[%c0_20, %c0_21] : memref<1x8xf32, #tpu.memory_space<vmem>>, vector<1x8xf32>
    tpu.vector_store %arg8[%c0_20, %c0_21], %26 {strides = array<i32>} : memref<1x8xf32, #tpu.memory_space<vmem>>, vector<1x8xf32>,
    return
  }
  func.func @transform_0(%arg0: i32) -> (i32, i32) {
    %c0_i32 = arith.constant 0 : i32
    %c0_i32_0 = arith.constant 0 : i32
    return %arg0, %c0_i32 : i32, i32
  }
  func.func @transform_1(%arg0: i32) -> (i32, i32) {
    %c0_i32 = arith.constant 0 : i32
    %c0_i32_0 = arith.constant 0 : i32
    %c0_i32_1 = arith.constant 0 : i32
    return %c0_i32, %c0_i32_0 : i32, i32
  }
  func.func @transform_2(%arg0: i32) -> (i32, i32) {
    %c0_i32 = arith.constant 0 : i32
    %c0_i32_0 = arith.constant 0 : i32
    %c0_i32_1 = arith.constant 0 : i32
    return %c0_i32, %c0_i32_0 : i32, i32
  }
  func.func @transform_3(%arg0: i32) -> (i32, i32) {
    %c0_i32 = arith.constant 0 : i32
    %c0_i32_0 = arith.constant 0 : i32
    %c0_i32_1 = arith.constant 0 : i32
    return %c0_i32, %c0_i32_0 : i32, i32
  }
  func.func @transform_4(%arg0: i32) -> (i32, i32) {
    %c0_i32 = arith.constant 0 : i32
    %c0_i32_0 = arith.constant 0 : i32
    %c0_i32_1 = arith.constant 0 : i32
    return %c0_i32, %c0_i32_0 : i32, i32
  }
  func.func @transform_5(%arg0: i32) -> (i32, i32) {
    %c0_i32 = arith.constant 0 : i32
    %c0_i32_0 = arith.constant 0 : i32
    %c0_i32_1 = arith.constant 0 : i32
    return %c0_i32, %c0_i32_0 : i32, i32
  }
  func.func @transform_6(%arg0: i32) -> (i32, i32) {
    %c0_i32 = arith.constant 0 : i32
    %c0_i32_0 = arith.constant 0 : i32
    %c0_i32_1 = arith.constant 0 : i32
    return %c0_i32, %c0_i32_0 : i32, i32
  }
  func.func @transform_7(%arg0: i32) -> (i32, i32) {
    %c0_i32 = arith.constant 0 : i32
    %c0_i32_0 = arith.constant 0 : i32
    return %c0_i32, %arg0 : i32, i32
  }
}

</mosaic_0001>

<bundles_post_ra>
// kernel: tpu_custom_call.1
= control target key start
LH: loop header
LB: loop body
LE: loop exit
PB: predicated region body
PF: predicated region fallthrough
CT: control target
= control target key end

     0   :  { %s760_s0 = inlined_call_operand.vmem [shape: f32[8,32], index: 0, kind: input, shape index: {}]   ;;  %s761_s1 = inlined_call_operand.vmem [shape: f32[64,32], index: 1, kind: input, shape index: {}]   ;;  %s762_s2 = inlined_call_operand.vmem [shape: f32[64,1], index: 2, kind: input, shape index: {}]   ;;  %s763_s3 = inlined_call_operand.vmem [shape: f32[32,64], index: 3, kind: input, shape index: {}]   ;;  %s764_s4 = inlined_call_operand.vmem [shape: f32[32,1], index: 4, kind: input, shape index: {}]   ;;  %s765_s5 = inlined_call_operand.vmem [shape: f32[1,32], index: 5, kind: input, shape index: {}]   ;;  %s766_s6 = inlined_call_operand.<no memory space> [shape: f32[1,1], index: 6, kind: input, shape index: {}]   ;;  %s767_s7 = inlined_call_operand.hbm [shape: f32[1,8], index: 7, kind: output, shape index: {}]  }
   0x1   :  { %v12_v0 = vstv %s766_s6 }
   0x2   :  { %13 = vst [vmem:[#allocation2] sm:$0x1] %v12_v0 }
   0x3   :  { %v29_v1 = vld [vmem:[%s760_s0] sm:$0xff]  ;;  %vm86_vm0 = vcmask 261120   ;;  %v31_v3 = vld [vmem:[%s761_s1 + $0x8] sm:$0xff]  ;;  %v607_v4 = vmov 0   ;;  %v32_v5 = vld [vmem:[%s761_s1 + $0x10] sm:$0xff] }
   0x4   :  { %v30_v2 = vld [vmem:[%s761_s1] sm:$0xff]  ;;  %503 = vmatprep.subr.msk.mxu0 %vm86_vm0, %v29_v1  ;;  %577 = vset.pattern.permute.xlu0 %v607_v4  ;;  %v40_v7 = vld [vmem:[%s762_s2 + $0x10] sm:$0xff]  ;;  %v39_v8 = vld [vmem:[%s762_s2 + $0x8] sm:$0xff] }
   0x5   :  { %505 = vmatprep.mubr.msk.f32.mxu0 %vm86_vm0, %v30_v2  ;;  %504 = vmatpush3.xpose.msk.msra.mxu0 %vm86_vm0, %v29_v1  ;;  %v38_v6 = vld [vmem:[%s762_s2] sm:$0xff]  ;;  %v41_v9 = vld [vmem:[%s762_s2 + $0x18] sm:$0xff] }
   0x6   :  { %578 = vset.pattern.permute.xlu1 %v607_v4  ;;  %48 = vperm.xlu0 %577, %v38_v6   ;;  %v33_v10 = vld [vmem:[%s761_s1 + $0x18] sm:$0xff]  ;;  %v34_v11 = vld [vmem:[%s761_s1 + $0x20] sm:$0xff] }
   0x7   :  { %58 = vperm.xlu1 %578, %v40_v7  }
   0x8   :  { %506 = vmatmul.mubr.msk.f32.vlgmr.msra.gmra.mrb[0].mxu0 %vm86_vm0, %v31_v3 }
   0x9   :  { %508 = vmatprep.mubr.msk.f32.mxu0 %vm86_vm0, %v32_v5 }
   0xa   :  { %14 = vsyncpa [#allocation4], 0  ;;  %53 = vperm.xlu0 %577, %v39_v8   ;;  %v42_v12 = vld [vmem:[%s762_s2 + $0x20] sm:$0xff]  ;;  %v43_v13 = vld [vmem:[%s762_s2 + $0x28] sm:$0xff]  ;;  %vm255_vm1 = vcmask 523264   ;;  %v608_v0 = vmov 0.0|0.0  }
   0xb   :  { %63 = vperm.xlu1 %578, %v41_v9   ;;  %v35_v14 = vld [vmem:[%s761_s1 + $0x28] sm:$0xff]  ;;  %v36_v15 = vld [vmem:[%s761_s1 + $0x30] sm:$0xff]  ;;  %v45_v17 = vld [vmem:[%s762_s2 + $0x38] sm:$0xff]  ;;  %566 = vmatprep.subr.bf16.mxu0 %v608_v0  ;;  %vm609_vm2 = vmmov 0   ;;  %v610_v1 = vmov 0.0   ;;  %s611_s24 = smov [#allocation3]  }
   0xc   :  { %509 = vmatmul.mubr.msk.f32.gmra.mrb[2].mxu0 %vm86_vm0, %v33_v10  ;;  %v44_v16 = vld [vmem:[%s762_s2 + $0x30] sm:$0xff]  ;;  %v37_v18 = vld [vmem:[%s761_s1 + $0x38] sm:$0xff]  ;;  %v231_v19 = vld [vmem:[%s764_s4] sm:$0xff]  ;;  %s455_s25 = sshll.u32 %s611_s24, 4  ;;  %vm447_vm3 = vcmask 57344   ;;  %s456_s25 = int_to_ptr.vmem [resolvable:$true] %s455_s25 }
   0xd   :  { %511 = vmatprep.mubr.msk.f32.mxu0 %vm86_vm0, %v34_v11  ;;  %v232_v20 = vld [vmem:[%s764_s4 + $0x8] sm:$0xff]  ;;  %v233_v21 = vld [vmem:[%s764_s4 + $0x10] sm:$0xff]  ;;  %v234_v22 = vld [vmem:[%s764_s4 + $0x18] sm:$0xff]  ;;  %s587_s26 = scalar_lea.vmem %s456_s25, 32  ;;  %p588_p1 = scmp.lt.s32.totalorder %s456_s25, %s456_s25 }
   0xe   :  { %68 = vperm.xlu0 %577, %v42_v12   ;;  %v358_v23 = vld [vmem:[#allocation2] sm:$0x1]  ;;  %v228_v61 = vld [vmem:[%s763_s3 + $0x8] sm:$0xff]  ;;  %v229_v62 = vld [vmem:[%s763_s3 + $0x10] sm:$0xff] }
   0xf   :  { %73 = vperm.xlu1 %578, %v43_v13   ;;  %v227_v24 = vld [vmem:[%s763_s3] sm:$0xff]  ;;  %v230_v63 = vld [vmem:[%s763_s3 + $0x18] sm:$0xff] }
  0x10   :  { %512 = vmatmul.mubr.msk.f32.gmra.mrb[4].mxu0 %vm86_vm0, %v35_v14  ;;  %533 = vmatprep.mubr.msk.f32.mxu1 %vm255_vm1, %v227_v24 }
  0x11   :  { %514 = vmatprep.mubr.msk.f32.mxu0 %vm86_vm0, %v36_v15 }
  0x12   :  { %78 = vperm.xlu0 %577, %v44_v16  }
  0x13   :  { %83 = vperm.xlu1 %578, %v45_v17  }
  0x14   :  { %515 = vmatmul.mubr.msk.f32.gmra.mrb[6].mxu0 %vm86_vm0, %v37_v18 }
  0x15   :  { %547 = vmatprep.mubr.msk.f32.mxu0 %vm609_vm2, %v610_v1 }
  0x16   :  { %237 = vperm.xlu0 %577, %v231_v19  }
  0x17   :  { %242 = vperm.xlu1 %578, %v232_v20   ;;  %v357_v20 = vld [vmem:[%s765_s5] sm:$0x1]  ;;  %s583_s5 = scalar_lea.vmem %s456_s25, 16 }
  0x18   :  { %p584_p0 = scmp.ne.s32.totalorder %s456_s25, %s583_s5  ;;  %p589_p2 = scmp.lt.s32.totalorder %s587_s26, %s583_s5 }
  0x1a   :  { %247 = vperm.xlu0 %577, %v233_v21   ;;  %v364_v21 = vlaneseq  ;;  %p590_p3 = por %p589_p2, %p588_p1 }
  0x1b   :  { %252 = vperm.xlu1 %578, %v234_v22  }
  0x1c   :  { %v365_v22 = vshrl.u32 %v364_v21, 7  ;;  %p591_p4 = pnand %p590_p3, %p584_p0 }
  0x1e   :  { %361 = vperm.xlu0 %577, %v358_v23   ;;  %v366_v23 = vsub.s32 0, %v365_v22 }
  0x85   :  { %v49_v25 = vpop.permute.xlu0 %48 }
  0x86   :  { %v59_v26 = vpop.permute.xlu1 %58 }
  0x89   :  { %v54_v27 = vpop.permute.xlu0 %53 }
  0x8a   :  { %v64_v28 = vpop.permute.xlu1 %63 }
  0x8d   :  { %v69_v41 = vpop.permute.xlu0 %68 }
  0x8e   :  { %v74_v38 = vpop.permute.xlu1 %73 }
  0x91   :  { %v79_v53 = vpop.permute.xlu0 %78 }
  0x92   :  { %v84_v50 = vpop.permute.xlu1 %83 }
  0x95   :  { %v238_v3 = vpop.permute.xlu0 %237 }
  0x96   :  { %v243_v2 = vpop.permute.xlu1 %242 }
  0x99   :  { %v248_v12 = vpop.permute.xlu0 %247 }
  0x9a   :  { %v253_v9 = vpop.permute.xlu1 %252 }
  0x9d   :  { %v362_v24 = vpop.permute.xlu0 %361 }
  0xdb   :  { %v507_v29 = vpop.f32.mrb[0].mxu0 }
  0xdc   :  { %v186_v30 = vadd.f32 %v507_v29, %v54_v27  ;;  %v180_v31 = vpop.f32.mrb[1].mxu0 }
  0xdd   :  { %v181_v32 = vadd.f32 %v180_v31, %v49_v25  ;;  %v367_v25 = vrot.slane %v362_v24, %v366_v23 }
  0xde   :  { %v220_v33 = vmax.f32 %v186_v30, 0.0 }
  0xdf   :  { %v219_v34 = vmax.f32 %v181_v32, 0.0  ;;  %v510_v35 = vpop.f32.mrb[2].mxu0 }
  0xe0   :  { %v196_v36 = vadd.f32 %v510_v35, %v64_v28  ;;  %v190_v37 = vpop.f32.mrb[3].mxu0 }
  0xe1   :  { %v191_v39 = vadd.f32 %v190_v37, %v59_v26  ;;  %v550_v40 = vpack.c.bf16 %v220_v33, %v219_v34 }
  0xe2   :  { %v222_v42 = vmax.f32 %v196_v36, 0.0 }
  0xe3   :  { %v221_v43 = vmax.f32 %v191_v39, 0.0  ;;  %v513_v44 = vpop.f32.mrb[4].mxu0  ;;  %551 = vmatprep.subr.bf16.mxu1 %v550_v40 }
  0xe4   :  { %v206_v45 = vadd.f32 %v513_v44, %v74_v38  ;;  %v200_v46 = vpop.f32.mrb[5].mxu0  ;;  %553 = vmatpush3.bf16.msra.mxu1 %v550_v40 }
  0xe5   :  { %v554_v47 = vpack.c.bf16 %v222_v42, %v221_v43  ;;  %v201_v48 = vadd.f32 %v200_v46, %v69_v41 }
  0xe6   :  { %v224_v49 = vmax.f32 %v206_v45, 0.0 }
  0xe7   :  { %v223_v51 = vmax.f32 %v201_v48, 0.0  ;;  %v516_v52 = vpop.f32.mrb[6].mxu0  ;;  %555 = vmatprep.subr.bf16.mxu1 %v554_v47 }
  0xe8   :  { %v216_v54 = vadd.f32 %v516_v52, %v84_v50  ;;  %v210_v55 = vpop.f32.mrb[7].mxu0  ;;  %557 = vmatpush3.bf16.msra.mxu1 %v554_v47 }
  0xe9   :  { %v558_v56 = vpack.c.bf16 %v224_v49, %v223_v51  ;;  %v211_v57 = vadd.f32 %v210_v55, %v79_v53 }
  0xea   :  { %v226_v58 = vmax.f32 %v216_v54, 0.0 }
  0xeb   :  { %v225_v59 = vmax.f32 %v211_v57, 0.0  ;;  %559 = vmatprep.subr.bf16.mxu1 %v558_v56 }
  0xec   :  { %561 = vmatpush3.bf16.msra.mxu1 %v558_v56 }
  0xed   :  { %v562_v60 = vpack.c.bf16 %v226_v58, %v225_v59 }
  0xef   :  { %563 = vmatprep.subr.bf16.mxu1 %v562_v60 }
  0xf0   :  { %565 = vmatpush3.bf16.msra.mxu1 %v562_v60 }
  0xf3   :  { %534 = vmatmul.mubr.msk.f32.vlgmr.msra.gmra.mrb[0].mxu1 %vm255_vm1, %v228_v61 }
  0xf4   :  { %536 = vmatprep.mubr.msk.f32.mxu1 %vm255_vm1, %v229_v62 }
  0xf7   :  { %537 = vmatmul.mubr.msk.f32.gmra.mrb[2].mxu1 %vm255_vm1, %v230_v63 }
 0x1c6   :  { %v535_v4 = vpop.f32.mrb[0].mxu1 }
 0x1c7   :  { %v340_v5 = vadd.f32 %v535_v4, %v243_v2  ;;  %v334_v6 = vpop.f32.mrb[1].mxu1 }
 0x1c8   :  { %v335_v7 = vadd.f32 %v334_v6, %v238_v3 }
 0x1c9   :  { %v354_v8 = vmax.f32 %v340_v5, 0.0 }
 0x1ca   :  { %v353_v10 = vmax.f32 %v335_v7, 0.0  ;;  %v538_v11 = vpop.f32.mrb[2].mxu1 }
 0x1cb   :  { %v350_v13 = vadd.f32 %v538_v11, %v253_v9  ;;  %v344_v14 = vpop.f32.mrb[3].mxu1 }
 0x1cc   :  { %v567_v15 = vpack.c.bf16 %v354_v8, %v353_v10  ;;  %v345_v16 = vadd.f32 %v344_v14, %v248_v12 }
 0x1cd   :  { %v356_v17 = vmax.f32 %v350_v13, 0.0 }
 0x1ce   :  { %v355_v18 = vmax.f32 %v345_v16, 0.0  ;;  %568 = vmatpush3.bf16.msra.mxu0 %v567_v15 }
 0x1cf   :  { %569 = vmatprep.subr.bf16.mxu0 %v608_v0 }
 0x1d0   :  { %v570_v19 = vpack.c.bf16 %v356_v17, %v355_v18 }
 0x1d2   :  { %571 = vmatpush3.bf16.msra.mxu0 %v570_v19 }
 0x1d5   :  { %548 = vmatmul.mubr.msk.f32.vlgmr.msra.gmra.mrb[8].mxu0 %vm86_vm0, %v357_v20 }
 0x2a8   :  { %v437_v26 = vpop.f32.mrb[8].mxu0 }
 0x2a9   :  { %v438_v27 = vadd.f32 %v437_v26, %v367_v25  ;;  %v549_v28 = vpop.f32.mrb[9].mxu0 }
 0x2ab   :  { %v441_v29 = vsub.f32 0.0, %v438_v27 }
 0x2ad   :  { %v442_v30 = vmul.f32 1.442695, %v441_v29 }
 0x2af   :  { %579 = vpow2.f32 %v442_v30 }
 0x2b9   :  { %v580_v31 = vpop.eup %579 }
 0x2ba   :  { %v444_v32 = vadd.f32 1.0, %v580_v31 }
 0x2bc   :  { %581 = vrcp.f32 %v444_v32 }
 0x2c6   :  { %v582_v33 = vpop.eup %581 }
 0x2c7   :  { %448 = vst.msk [vmem:[#allocation3] sm:$0x1] %vm447_vm3, %v582_v33 }
 0x2c8   :  { %594 = shalt.err (!%p591_p4)
}
 0x2c9   :  { %s595_s29 = scalar_lea.hbm %s767_s7, 16 }
 0x2ca   :  { %p596_p5 = scmp.ne.s32.totalorder %s767_s7, %s595_s29  ;;  %p599_p6 = scmp.lt.u32.totalorder %s595_s29, %s767_s7 }
 0x2cc   :  { %p601_p7 = pnand %p599_p6, %p596_p5 }
 0x2ce   :  { %604 = shalt.err (!%p601_p7)
}
 0x2cf   :  { %458 = dma.vmem_to_hbm [thread:$0]  %s456_s25, 16, %s767_s7, [#allocation4]  }
 0x2d0   :  { %605 = dma.done.wait [#allocation4], 16  }
 0x2d1   :  { %606 = vsyncadd [#allocation4], 4294967280 }
 0x2d2   :  { %462 = vsyncpa [#allocation4], 1 }

</bundles_post_ra>
